<compile_context>
chip_gen: v7x
topology: tpu7x:2x2x1
jax: 0.10.0
libtpu: 0.0.40
codegen_flags: <defaults>
</compile_context>

<pallas_src>
import functools

import jax
import jax.numpy as jnp
from jax.experimental import pallas as pl
from jax.experimental.pallas import tpu as pltpu

HIDDEN_DIMS = (512, 256, 128, 64, 32)
LANE = 128


def _round_up(n, m):
    return ((n + m - 1) // m) * m


def _cdiv(a, b):
    return -(-a // b)


@functools.lru_cache(maxsize=None)
def _chip_config():
    """Trace-time chip detection for generation-specific tuning.

    Returns (num_tensorcores_sharing_parallel_grid, mxu_m_granule, use_bf16_tanh).
    Defaults are conservative (single core, 128 granule, f32 tanh) on unknown HW.
    """
    try:
        kind = jax.devices()[0].device_kind.lower()
    except Exception:  # pragma: no cover - no TPU visible at trace time
        kind = ""
    is_v6_or_v7 = ("v6" in kind) or ("v7" in kind)
    num_tc = 2 if (("v7" in kind) or ("v4" in kind) or ("v3" in kind)) else 1
    mxu_m = 256 if is_v6_or_v7 else 128
    use_bf16_tanh = is_v6_or_v7          # v5e VPU/EUP have no bf16 -> keep f32 there
    return num_tc, mxu_m, use_bf16_tanh


def _choose_tiling(batch, batch_tile, num_cores, mxu_granule):
    """Pick (tile, padded_batch, n_steps).

    - pads only to the 8-row sublane granule (no full-extra-tile waste),
    - guarantees >= num_cores grid steps when the batch allows it (v7x 2 TCs),
    - snaps the tile up to the MXU M-granularity only when the extra padding
      is <= ~6% of the batch.
    """
    b_pad8 = _round_up(max(batch, 1), 8)
    max_tile = min(batch_tile, b_pad8)
    if num_cores > 1 and b_pad8 >= 2 * 8:
        max_tile = min(max_tile, _round_up(_cdiv(b_pad8, num_cores), 8))
    n_steps = _cdiv(b_pad8, max_tile)
    # Even split over the steps, rounded to 8 rows -> waste < 8 rows per step.
    tile = _round_up(_cdiv(b_pad8, n_steps), 8)
    # Optional snap to MXU M granularity (256 v6e/v7x, 128 v5e) if cheap.
    tile_mxu = _round_up(tile, mxu_granule)
    if tile_mxu <= max(batch_tile, tile) and (tile_mxu - tile) * n_steps * 16 <= b_pad8:
        tile = tile_mxu
    return tile, tile * n_steps, n_steps


def _mlp_kernel(x_ref,
                w1_ref, b1_ref, w2_ref, b2_ref, w3_ref, b3_ref,
                w4_ref, b4_ref, w5_ref, b5_ref, wo_ref, bo_ref,
                o_ref, *, use_bf16_tanh):
    """Whole MLP forward for one batch tile.

    bf16 MXU inputs, f32 accumulate + bias add; tanh in bf16 on v6e/v7x
    (use_bf16_tanh=True) or f32 on v5e/unknown. Dropout == identity (eval).
    """

    def layer(h_bf16, w_ref, b_ref, activate):
        acc = jnp.dot(h_bf16, w_ref[...], preferred_element_type=jnp.float32)
        acc = acc + b_ref[...]                        # f32 bias add (VPU)
        if not activate:
            return acc                                # final layer stays f32 until store
        if use_bf16_tanh:
            return jnp.tanh(acc.astype(jnp.bfloat16))  # bf16 EUP tanh (v6e/v7x)
        return jnp.tanh(acc).astype(jnp.bfloat16)     # f32 EUP tanh (v5e-safe)

    h = x_ref[...]                                    # already bf16 from the wrapper
    h = layer(h, w1_ref, b1_ref, True)
    h = layer(h, w2_ref, b2_ref, True)
    h = layer(h, w3_ref, b3_ref, True)
    h = layer(h, w4_ref, b4_ref, True)
    h = layer(h, w5_ref, b5_ref, True)
    out = layer(h, wo_ref, bo_ref, False)
    o_ref[...] = out.astype(o_ref.dtype)              # lane-dense bf16 store (out_pad = k*128)


def prepare_params(params, lane=LANE):
    """Zero-pad layer widths to multiples of 128 lanes; cast weights to bf16.

    params: list of (W, b), W shaped (in_features, out_features), f32.
    Returns list of (W_bf16 padded, b_f32 padded as (1, out_pad)).
    The first layer's input dim is left unpadded (x itself is not padded).
    Padding is exact: tanh(0)=0 and padded weight rows/cols are zero.
    """
    prepped = []
    prev_out_pad = params[0][0].shape[0]  # = input_dim (unpadded)
    for W, b in params:
        din, dout = W.shape
        din_pad = prev_out_pad
        dout_pad = _round_up(dout, lane)
        Wp = jnp.zeros((din_pad, dout_pad), jnp.float32).at[:din, :dout].set(W)
        bp = jnp.zeros((1, dout_pad), jnp.float32).at[:, :dout].set(b)
        prepped.append((Wp.astype(jnp.bfloat16), bp))
        prev_out_pad = dout_pad
    return prepped


@functools.partial(jax.jit, static_argnames=("output_dim", "batch_tile"))
def mlp_forward(x, prepped_params, *, output_dim, batch_tile=1024):
    """x: (B, input_dim) f32 (or bf16). prepped_params: output of prepare_params()."""
    assert batch_tile > 0 and batch_tile % 8 == 0, "batch_tile must be a multiple of 8"
    B, input_dim = x.shape
    out_pad = prepped_params[-1][0].shape[1]

    num_cores, mxu_granule, use_bf16_tanh = _chip_config()
    tile, B_pad, _ = _choose_tiling(B, batch_tile, num_cores, mxu_granule)

    # Pre-cast x to bf16 at the boundary; pad rows only when needed.
    x = x.astype(jnp.bfloat16)
    if B_pad != B:
        x = jnp.pad(x, ((0, B_pad - B), (0, 0)))

    # x tiled over batch; weights/biases as full-array resident VMEM blocks.
    flat = []
    param_specs = []
    for W, b in prepped_params:
        flat += [W, b]
        param_specs.append(pl.BlockSpec(W.shape, lambda i: (0, 0)))
        param_specs.append(pl.BlockSpec(b.shape, lambda i: (0, 0)))

    x_spec = pl.BlockSpec((tile, input_dim), lambda i: (i, 0))
    out_spec = pl.BlockSpec((tile, out_pad), lambda i: (i, 0))

    grid_spec = pltpu.PrefetchScalarGridSpec(
        num_scalar_prefetch=0,
        grid=(B_pad // tile,),
        in_specs=[x_spec] + param_specs,
        out_specs=out_spec,
    )

    kernel = functools.partial(_mlp_kernel, use_bf16_tanh=use_bf16_tanh)

    out_padded = pl.pallas_call(
        kernel,
        out_shape=jax.ShapeDtypeStruct((B_pad, out_pad), jnp.bfloat16),
        grid_spec=grid_spec,
        compiler_params=pltpu.CompilerParams(
            dimension_semantics=("parallel",),
            vmem_limit_bytes=32 * 1024 * 1024,
        ),
    )(x, *flat)

    return out_padded[:B, :output_dim].astype(jnp.float32)


def init_params(key, input_dim, output_dim):
    """Deterministic param init mirroring nn.Linear shapes (stored as (in, out))."""
    dims = (input_dim,) + HIDDEN_DIMS + (output_dim,)
    params = []
    for i in range(len(dims) - 1):
        fan_in, fan_out = dims[i], dims[i + 1]
        key, kw, kb = jax.random.split(key, 3)
        bound = 1.0 / (fan_in ** 0.5)  # PyTorch nn.Linear default uniform bound
        W = jax.random.uniform(kw, (fan_in, fan_out), jnp.float32, -bound, bound)
        b = jax.random.uniform(kb, (fan_out,), jnp.float32, -bound, bound)
        params.append((W, b))
    return params


def mlp_reference(x, params, *, match_kernel_numerics=True, use_bf16_tanh=False):
    """Pure-JAX reference.

    match_kernel_numerics=True mirrors the kernel numerics (bf16 matmul inputs,
    f32 accumulation, bf16 or f32 tanh, bf16 output cast); False is plain f32.
    """
    n = len(params)
    h = x
    for idx, (W, b) in enumerate(params):
        last = idx == n - 1
        if match_kernel_numerics:
            acc = jnp.dot(h.astype(jnp.bfloat16), W.astype(jnp.bfloat16),
                          preferred_element_type=jnp.float32) + b
            if last:
                h = acc.astype(jnp.bfloat16)
            elif use_bf16_tanh:
                h = jnp.tanh(acc.astype(jnp.bfloat16))
            else:
                h = jnp.tanh(acc).astype(jnp.bfloat16)
        else:
            acc = jnp.dot(h, W) + b
            h = acc if last else jnp.tanh(acc)
    return h.astype(jnp.float32)


if __name__ == "__main__":
    key = jax.random.PRNGKey(0)
    key, kx = jax.random.split(key)

    batch, input_dim, output_dim = 16, 32, 8
    x = jax.random.normal(kx, (batch, input_dim), jnp.float32)
    params = init_params(key, input_dim, output_dim)
    prepped = prepare_params(params)

    out = mlp_forward(x, prepped, output_dim=output_dim, batch_tile=1024)
    out = jax.block_until_ready(out)

    _, _, use_bf16_tanh = _chip_config()
    ref_bf16 = mlp_reference(x, params, match_kernel_numerics=True,
                             use_bf16_tanh=use_bf16_tanh)
    ref_f32 = mlp_reference(x, params, match_kernel_numerics=False)

    assert out.shape == (batch, output_dim)
    assert jnp.allclose(out, ref_bf16, atol=2e-2, rtol=2e-2), "mismatch vs bf16-mirrored reference"
    assert jnp.allclose(out, ref_f32, atol=1e-1, rtol=1e-1), "mismatch vs f32 reference"

    print("KERNEL_OK")
</pallas_src>

<mosaic_0001>
module attributes {stable_mosaic.version = 11 : i64} {
  func.func @_mlp_kernel(%arg0: i32, %arg1: memref<16x32xbf16, #tpu.memory_space<vmem>>, %arg2: memref<32x512xbf16, #tpu.memory_space<vmem>>, %arg3: memref<1x512xf32, #tpu.memory_space<vmem>>, %arg4: memref<512x256xbf16, #tpu.memory_space<vmem>>, %arg5: memref<1x256xf32, #tpu.memory_space<vmem>>, %arg6: memref<256x128xbf16, #tpu.memory_space<vmem>>, %arg7: memref<1x128xf32, #tpu.memory_space<vmem>>, %arg8: memref<128x128xbf16, #tpu.memory_space<vmem>>, %arg9: memref<1x128xf32, #tpu.memory_space<vmem>>, %arg10: memref<128x128xbf16, #tpu.memory_space<vmem>>, %arg11: memref<1x128xf32, #tpu.memory_space<vmem>>, %arg12: memref<128x128xbf16, #tpu.memory_space<vmem>>, %arg13: memref<1x128xf32, #tpu.memory_space<vmem>>, %arg14: memref<16x128xbf16, #tpu.memory_space<vmem>>) attributes {dimension_semantics = [#tpu.dimension_semantics<parallel>], iteration_bounds = array<i64: 1>, scalar_prefetch = 0 : i64, scratch_operands = 0 : i64, tpu.core_type = #tpu.core_type<tc>, window_params = [{transform_indices = @transform_0, window_bounds = array<i64: 16, 32>}, {pipeline_mode = #tpu.pipeline_mode<synchronous>, transform_indices = @transform_1, window_bounds = array<i64: 32, 512>}, {pipeline_mode = #tpu.pipeline_mode<synchronous>, transform_indices = @transform_2, window_bounds = array<i64: 1, 512>}, {pipeline_mode = #tpu.pipeline_mode<synchronous>, transform_indices = @transform_3, window_bounds = array<i64: 512, 256>}, {pipeline_mode = #tpu.pipeline_mode<synchronous>, transform_indices = @transform_4, window_bounds = array<i64: 1, 256>}, {pipeline_mode = #tpu.pipeline_mode<synchronous>, transform_indices = @transform_5, window_bounds = array<i64: 256, 128>}, {pipeline_mode = #tpu.pipeline_mode<synchronous>, transform_indices = @transform_6, window_bounds = array<i64: 1, 128>}, {pipeline_mode = #tpu.pipeline_mode<synchronous>, transform_indices = @transform_7, window_bounds = array<i64: 128, 128>}, {pipeline_mode = #tpu.pipeline_mode<synchronous>, transform_indices = @transform_8, window_bounds = array<i64: 1, 128>}, {pipeline_mode = #tpu.pipeline_mode<synchronous>, transform_indices = @transform_9, window_bounds = array<i64: 128, 128>}, {pipeline_mode = #tpu.pipeline_mode<synchronous>, transform_indices = @transform_10, window_bounds = array<i64: 1, 128>}, {pipeline_mode = #tpu.pipeline_mode<synchronous>, transform_indices = @transform_11, window_bounds = array<i64: 128, 128>}, {pipeline_mode = #tpu.pipeline_mode<synchronous>, transform_indices = @transform_12, window_bounds = array<i64: 1, 128>}, {transform_indices = @transform_13, window_bounds = array<i64: 16, 128>}]} {
    %c0 = arith.constant 0 : index
    %c0_0 = arith.constant 0 : index
    %0 = vector.load %arg1[%c0, %c0_0] : memref<16x32xbf16, #tpu.memory_space<vmem>>, vector<16x32xbf16>
    %c0_1 = arith.constant 0 : index
    %c0_2 = arith.constant 0 : index
    %1 = vector.load %arg2[%c0_1, %c0_2] : memref<32x512xbf16, #tpu.memory_space<vmem>>, vector<32x512xbf16>
    %cst = arith.constant dense<0.000000e+00> : vector<16x512xf32>
    %2 = tpu.matmul %0, %1, %cst {dimension_numbers = #tpu.dot_dimension_numbers<[1], [0], [0], [1], [0, 0, 1, 1], [], []>} : vector<16x32xbf16>, vector<32x512xbf16>, vector<16x512xf32> -> vector<16x512xf32>
    %c0_3 = arith.constant 0 : index
    %c0_4 = arith.constant 0 : index
    %3 = vector.load %arg3[%c0_3, %c0_4] : memref<1x512xf32, #tpu.memory_space<vmem>>, vector<1x512xf32>
    %4 = vector.broadcast %3 : vector<1x512xf32> to vector<16x512xf32>
    %5 = arith.addf %2, %4 : vector<16x512xf32>
    %6 = math.tanh %5 : vector<16x512xf32>
    %7 = arith.truncf %6 : vector<16x512xf32> to vector<16x512xbf16>
    %c0_5 = arith.constant 0 : index
    %c0_6 = arith.constant 0 : index
    %8 = vector.load %arg4[%c0_5, %c0_6] : memref<512x256xbf16, #tpu.memory_space<vmem>>, vector<512x256xbf16>
    %cst_7 = arith.constant dense<0.000000e+00> : vector<16x256xf32>
    %9 = tpu.matmul %7, %8, %cst_7 {dimension_numbers = #tpu.dot_dimension_numbers<[1], [0], [0], [1], [0, 0, 1, 1], [], []>} : vector<16x512xbf16>, vector<512x256xbf16>, vector<16x256xf32> -> vector<16x256xf32>
    %c0_8 = arith.constant 0 : index
    %c0_9 = arith.constant 0 : index
    %10 = vector.load %arg5[%c0_8, %c0_9] : memref<1x256xf32, #tpu.memory_space<vmem>>, vector<1x256xf32>
    %11 = vector.broadcast %10 : vector<1x256xf32> to vector<16x256xf32>
    %12 = arith.addf %9, %11 : vector<16x256xf32>
    %13 = math.tanh %12 : vector<16x256xf32>
    %14 = arith.truncf %13 : vector<16x256xf32> to vector<16x256xbf16>
    %c0_10 = arith.constant 0 : index
    %c0_11 = arith.constant 0 : index
    %15 = vector.load %arg6[%c0_10, %c0_11] : memref<256x128xbf16, #tpu.memory_space<vmem>>, vector<256x128xbf16>
    %cst_12 = arith.constant dense<0.000000e+00> : vector<16x128xf32>
    %16 = tpu.matmul %14, %15, %cst_12 {dimension_numbers = #tpu.dot_dimension_numbers<[1], [0], [0], [1], [0, 0, 1, 1], [], []>} : vector<16x256xbf16>, vector<256x128xbf16>, vector<16x128xf32> -> vector<16x128xf32>
    %c0_13 = arith.constant 0 : index
    %c0_14 = arith.constant 0 : index
    %17 = vector.load %arg7[%c0_13, %c0_14] : memref<1x128xf32, #tpu.memory_space<vmem>>, vector<1x128xf32>
    %18 = vector.broadcast %17 : vector<1x128xf32> to vector<16x128xf32>
    %19 = arith.addf %16, %18 : vector<16x128xf32>
    %20 = math.tanh %19 : vector<16x128xf32>
    %21 = arith.truncf %20 : vector<16x128xf32> to vector<16x128xbf16>
    %c0_15 = arith.constant 0 : index
    %c0_16 = arith.constant 0 : index
    %22 = vector.load %arg8[%c0_15, %c0_16] : memref<128x128xbf16, #tpu.memory_space<vmem>>, vector<128x128xbf16>
    %cst_17 = arith.constant dense<0.000000e+00> : vector<16x128xf32>
    %23 = tpu.matmul %21, %22, %cst_17 {dimension_numbers = #tpu.dot_dimension_numbers<[1], [0], [0], [1], [0, 0, 1, 1], [], []>} : vector<16x128xbf16>, vector<128x128xbf16>, vector<16x128xf32> -> vector<16x128xf32>
    %c0_18 = arith.constant 0 : index
    %c0_19 = arith.constant 0 : index
    %24 = vector.load %arg9[%c0_18, %c0_19] : memref<1x128xf32, #tpu.memory_space<vmem>>, vector<1x128xf32>
    %25 = vector.broadcast %24 : vector<1x128xf32> to vector<16x128xf32>
    %26 = arith.addf %23, %25 : vector<16x128xf32>
    %27 = math.tanh %26 : vector<16x128xf32>
    %28 = arith.truncf %27 : vector<16x128xf32> to vector<16x128xbf16>
    %c0_20 = arith.constant 0 : index
    %c0_21 = arith.constant 0 : index
    %29 = vector.load %arg10[%c0_20, %c0_21] : memref<128x128xbf16, #tpu.memory_space<vmem>>, vector<128x128xbf16>
    %cst_22 = arith.constant dense<0.000000e+00> : vector<16x128xf32>
    %30 = tpu.matmul %28, %29, %cst_22 {dimension_numbers = #tpu.dot_dimension_numbers<[1], [0], [0], [1], [0, 0, 1, 1], [], []>} : vector<16x128xbf16>, vector<128x128xbf16>, vector<16x128xf32> -> vector<16x128xf32>
    %c0_23 = arith.constant 0 : index
    %c0_24 = arith.constant 0 : index
    %31 = vector.load %arg11[%c0_23, %c0_24] : memref<1x128xf32, #tpu.memory_space<vmem>>, vector<1x128xf32>
    %32 = vector.broadcast %31 : vector<1x128xf32> to vector<16x128xf32>
    %33 = arith.addf %30, %32 : vector<16x128xf32>
    %34 = math.tanh %33 : vector<16x128xf32>
    %35 = arith.truncf %34 : vector<16x128xf32> to vector<16x128xbf16>
    %c0_25 = arith.constant 0 : index
    %c0_26 = arith.constant 0 : index
    %36 = vector.load %arg12[%c0_25, %c0_26] : memref<128x128xbf16, #tpu.memory_space<vmem>>, vector<128x128xbf16>
    %cst_27 = arith.constant dense<0.000000e+00> : vector<16x128xf32>
    %37 = tpu.matmul %35, %36, %cst_27 {dimension_numbers = #tpu.dot_dimension_numbers<[1], [0], [0], [1], [0, 0, 1, 1], [], []>} : vector<16x128xbf16>, vector<128x128xbf16>, vector<16x128xf32> -> vector<16x128xf32>
    %c0_28 = arith.constant 0 : index
    %c0_29 = arith.constant 0 : index
    %38 = vector.load %arg13[%c0_28, %c0_29] : memref<1x128xf32, #tpu.memory_space<vmem>>, vector<1x128xf32>
    %39 = vector.broadcast %38 : vector<1x128xf32> to vector<16x128xf32>
    %40 = arith.addf %37, %39 : vector<16x128xf32>
    %41 = arith.truncf %40 : vector<16x128xf32> to vector<16x128xbf16>
    %c0_30 = arith.constant 0 : index
    %c0_31 = arith.constant 0 : index
    %42 = vector.load %arg14[%c0_30, %c0_31] : memref<16x128xbf16, #tpu.memory_space<vmem>>, vector<16x128xbf16>
    tpu.vector_store %arg14[%c0_30, %c0_31], %41 {strides = array<i32>} : memref<16x128xbf16, #tpu.memory_space<vmem>>, vector<16x128xbf16>,
    return
  }
  func.func @transform_0(%arg0: i32) -> (i32, i32) {
    %c0_i32 = arith.constant 0 : i32
    %c0_i32_0 = arith.constant 0 : i32
    return %arg0, %c0_i32 : i32, i32
  }
  func.func @transform_1(%arg0: i32) -> (i32, i32) {
    %c0_i32 = arith.constant 0 : i32
    %c0_i32_0 = arith.constant 0 : i32
    %c0_i32_1 = arith.constant 0 : i32
    return %c0_i32, %c0_i32_0 : i32, i32
  }
  func.func @transform_2(%arg0: i32) -> (i32, i32) {
    %c0_i32 = arith.constant 0 : i32
    %c0_i32_0 = arith.constant 0 : i32
    %c0_i32_1 = arith.constant 0 : i32
    return %c0_i32, %c0_i32_0 : i32, i32
  }
  func.func @transform_3(%arg0: i32) -> (i32, i32) {
    %c0_i32 = arith.constant 0 : i32
    %c0_i32_0 = arith.constant 0 : i32
    %c0_i32_1 = arith.constant 0 : i32
    return %c0_i32, %c0_i32_0 : i32, i32
  }
  func.func @transform_4(%arg0: i32) -> (i32, i32) {
    %c0_i32 = arith.constant 0 : i32
    %c0_i32_0 = arith.constant 0 : i32
    %c0_i32_1 = arith.constant 0 : i32
    return %c0_i32, %c0_i32_0 : i32, i32
  }
  func.func @transform_5(%arg0: i32) -> (i32, i32) {
    %c0_i32 = arith.constant 0 : i32
    %c0_i32_0 = arith.constant 0 : i32
    %c0_i32_1 = arith.constant 0 : i32
    return %c0_i32, %c0_i32_0 : i32, i32
  }
  func.func @transform_6(%arg0: i32) -> (i32, i32) {
    %c0_i32 = arith.constant 0 : i32
    %c0_i32_0 = arith.constant 0 : i32
    %c0_i32_1 = arith.constant 0 : i32
    return %c0_i32, %c0_i32_0 : i32, i32
  }
  func.func @transform_7(%arg0: i32) -> (i32, i32) {
    %c0_i32 = arith.constant 0 : i32
    %c0_i32_0 = arith.constant 0 : i32
    %c0_i32_1 = arith.constant 0 : i32
    return %c0_i32, %c0_i32_0 : i32, i32
  }
  func.func @transform_8(%arg0: i32) -> (i32, i32) {
    %c0_i32 = arith.constant 0 : i32
    %c0_i32_0 = arith.constant 0 : i32
    %c0_i32_1 = arith.constant 0 : i32
    return %c0_i32, %c0_i32_0 : i32, i32
  }
  func.func @transform_9(%arg0: i32) -> (i32, i32) {
    %c0_i32 = arith.constant 0 : i32
    %c0_i32_0 = arith.constant 0 : i32
    %c0_i32_1 = arith.constant 0 : i32
    return %c0_i32, %c0_i32_0 : i32, i32
  }
  func.func @transform_10(%arg0: i32) -> (i32, i32) {
    %c0_i32 = arith.constant 0 : i32
    %c0_i32_0 = arith.constant 0 : i32
    %c0_i32_1 = arith.constant 0 : i32
    return %c0_i32, %c0_i32_0 : i32, i32
  }
  func.func @transform_11(%arg0: i32) -> (i32, i32) {
    %c0_i32 = arith.constant 0 : i32
    %c0_i32_0 = arith.constant 0 : i32
    %c0_i32_1 = arith.constant 0 : i32
    return %c0_i32, %c0_i32_0 : i32, i32
  }
  func.func @transform_12(%arg0: i32) -> (i32, i32) {
    %c0_i32 = arith.constant 0 : i32
    %c0_i32_0 = arith.constant 0 : i32
    %c0_i32_1 = arith.constant 0 : i32
    return %c0_i32, %c0_i32_0 : i32, i32
  }
  func.func @transform_13(%arg0: i32) -> (i32, i32) {
    %c0_i32 = arith.constant 0 : i32
    %c0_i32_0 = arith.constant 0 : i32
    return %arg0, %c0_i32 : i32, i32
  }
}

</mosaic_0001>

<bundles_post_ra>
// kernel: mlp_forward.1
= control target key start
LH: loop header
LB: loop body
LE: loop exit
PB: predicated region body
PF: predicated region fallthrough
CT: control target
= control target key end

     0   :  { %18 = vsyncpa [#allocation3], 0  ;;  %s2320_s0 = inlined_call_operand.vmem [shape: bf16[16,32], index: 0, kind: input, shape index: {}]   ;;  %s2321_s1 = inlined_call_operand.hbm [shape: bf16[32,512], index: 1, kind: input, shape index: {}]   ;;  %s2322_s2 = inlined_call_operand.hbm [shape: f32[1,512], index: 2, kind: input, shape index: {}]   ;;  %s2323_s3 = inlined_call_operand.hbm [shape: bf16[512,256], index: 3, kind: input, shape index: {}]   ;;  %s2324_s4 = inlined_call_operand.hbm [shape: f32[1,256], index: 4, kind: input, shape index: {}]   ;;  %s2325_s5 = inlined_call_operand.hbm [shape: bf16[256,128], index: 5, kind: input, shape index: {}]   ;;  %s2326_s6 = inlined_call_operand.vmem [shape: f32[1,128], index: 6, kind: input, shape index: {}]   ;;  %s2327_s7 = inlined_call_operand.hbm [shape: bf16[128,128], index: 7, kind: input, shape index: {}]   ;;  %s2328_s8 = inlined_call_operand.hbm [shape: f32[1,128], index: 8, kind: input, shape index: {}]   ;;  %s2329_s9 = inlined_call_operand.hbm [shape: bf16[128,128], index: 9, kind: input, shape index: {}]   ;;  %s2330_s10 = inlined_call_operand.hbm [shape: f32[1,128], index: 10, kind: input, shape index: {}]   ;;  %s2331_s11 = inlined_call_operand.vmem [shape: bf16[128,128], index: 11, kind: input, shape index: {}]   ;;  %s2332_s12 = inlined_call_operand.vmem [shape: f32[1,128], index: 12, kind: input, shape index: {}]   ;;  %s2333_s13 = inlined_call_operand.vmem [shape: bf16[16,128], index: 13, kind: output, shape index: {}]  }
   0x1   :  { %19 = vsyncpa [#allocation5], 0 }
   0x2   :  { %20 = vsyncpa [#allocation8], 0 }
   0x3   :  { %21 = vsyncpa [#allocation11], 0 }
   0x4   :  { %22 = vsyncpa [#allocation14], 0  ;;  %s2022_s25 = smov [#allocation4]   ;;  %s2023_s27 = smov [#allocation7]  }
   0x5   :  { %s43_s26 = sshll.u32 %s2022_s25, 4  ;;  %s65_s28 = sshll.u32 %s2023_s27, 4  ;;  %s44_s26 = int_to_ptr.vmem [resolvable:$true] %s43_s26  ;;  %s66_s28 = int_to_ptr.vmem [resolvable:$true] %s65_s28 }
   0x6   :  { %s1814_s14 = scalar_lea.hbm %s2322_s2, 64 }
   0x7   :  { %p1815_p0 = scmp.ne.s32.totalorder %s2322_s2, %s1814_s14  ;;  %p1818_p1 = scmp.lt.u32.totalorder %s1814_s14, %s2322_s2 }
   0x9   :  { %p1820_p2 = pnand %p1818_p1, %p1815_p0 }
   0xb   :  { %1823 = shalt.err (!%p1820_p2)
}
   0xc   :  { %s1824_s19 = scalar_lea.vmem %s44_s26, 64  ;;  %p1829_p4 = scmp.lt.s32.totalorder %s44_s26, %s44_s26 }
   0xd   :  { %p1825_p3 = scmp.ne.s32.totalorder %s44_s26, %s1824_s19  ;;  %p1830_p5 = scmp.lt.s32.totalorder %s1824_s19, %s1824_s19 }
   0xf   :  { %p1831_p6 = por %p1830_p5, %p1829_p4 }
  0x11   :  { %p1832_p7 = pnand %p1831_p6, %p1825_p3 }
  0x13   :  { %1835 = shalt.err (!%p1832_p7)
}
  0x14   :  { %46 = dma.hbm_to_vmem [thread:$0]  %s2322_s2, 64, %s44_s26, [#allocation5]  }
  0x15   :  { %s1836_s24 = scalar_lea.hbm %s2324_s4, 32 }
  0x16   :  { %p1837_p8 = scmp.ne.s32.totalorder %s2324_s4, %s1836_s24  ;;  %p1840_p9 = scmp.lt.u32.totalorder %s1836_s24, %s2324_s4 }
  0x18   :  { %p1842_p10 = pnand %p1840_p9, %p1837_p8 }
  0x1a   :  { %1845 = shalt.err (!%p1842_p10)
}
  0x1b   :  { %s1846_s14 = scalar_lea.vmem %s66_s28, 32  ;;  %p1851_p12 = scmp.lt.s32.totalorder %s66_s28, %s66_s28 }
  0x1c   :  { %p1847_p11 = scmp.ne.s32.totalorder %s66_s28, %s1846_s14  ;;  %p1852_p13 = scmp.lt.s32.totalorder %s1846_s14, %s1846_s14 }
  0x1e   :  { %p1853_p0 = por %p1852_p13, %p1851_p12 }
  0x20   :  { %p1854_p1 = pnand %p1853_p0, %p1847_p11 }
  0x22   :  { %1857 = shalt.err (!%p1854_p1)
}
  0x23   :  { %68 = dma.hbm_to_vmem [thread:$0]  %s2324_s4, 32, %s66_s28, [#allocation8]  }
  0x24   :  { %s2024_s15 = smov [#allocation10]   ;;  %s2025_s17 = smov [#allocation13]  }
  0x25   :  { %s88_s16 = sshll.u32 %s2024_s15, 4  ;;  %s110_s18 = sshll.u32 %s2025_s17, 4  ;;  %s89_s16 = int_to_ptr.vmem [resolvable:$true] %s88_s16  ;;  %s2134_s18 = int_to_ptr.vmem [resolvable:$true] %s110_s18 }
  0x26   :  { %s1858_s21 = scalar_lea.hbm %s2327_s7, 1024 }
  0x27   :  { %p1859_p2 = scmp.ne.s32.totalorder %s2327_s7, %s1858_s21  ;;  %p1862_p3 = scmp.lt.u32.totalorder %s1858_s21, %s2327_s7 }
  0x29   :  { %p1864_p4 = pnand %p1862_p3, %p1859_p2 }
  0x2b   :  { %1867 = shalt.err (!%p1864_p4)
}
  0x2c   :  { %s1868_s4 = scalar_lea.vmem %s89_s16, 1024  ;;  %p1873_p6 = scmp.lt.s32.totalorder %s89_s16, %s89_s16 }
  0x2d   :  { %p1869_p5 = scmp.ne.s32.totalorder %s89_s16, %s1868_s4  ;;  %p1874_p7 = scmp.lt.s32.totalorder %s1868_s4, %s1868_s4 }
  0x2f   :  { %p1875_p8 = por %p1874_p7, %p1873_p6 }
  0x31   :  { %p1876_p9 = pnand %p1875_p8, %p1869_p5 }
  0x33   :  { %1879 = shalt.err (!%p1876_p9)
}
  0x34   :  { %s2026_s28 = smov 64   ;;  %s2027_s27 = smov 4  }
  0x35   :  { %94 = dma.hbm_to_vmem [thread:$0]  %s2327_s7, 1024, %s89_s16, [#allocation11], %s2026_s28, %s2026_s28, %s2027_s27  }
  0x36   :  { %s1880_s26 = scalar_lea.hbm %s2329_s9, 1024 }
  0x37   :  { %p1881_p10 = scmp.ne.s32.totalorder %s2329_s9, %s1880_s26  ;;  %p1884_p11 = scmp.lt.u32.totalorder %s1880_s26, %s2329_s9 }
  0x39   :  { %p1886_p12 = pnand %p1884_p11, %p1881_p10 }
  0x3b   :  { %1889 = shalt.err (!%p1886_p12)
}
  0x3c   :  { %s1890_s21 = scalar_lea.vmem %s2134_s18, 1024  ;;  %p1895_p0 = scmp.lt.s32.totalorder %s2134_s18, %s2134_s18 }
  0x3d   :  { %p1891_p13 = scmp.ne.s32.totalorder %s2134_s18, %s1890_s21  ;;  %p1896_p1 = scmp.lt.s32.totalorder %s1890_s21, %s1890_s21 }
  0x3f   :  { %p1897_p2 = por %p1896_p1, %p1895_p0 }
  0x41   :  { %p1898_p3 = pnand %p1897_p2, %p1891_p13 }
  0x43   :  { %1901 = shalt.err (!%p1898_p3)
}
  0x44   :  { %116 = dma.hbm_to_vmem [thread:$0]  %s2329_s9, 1024, %s2134_s18, [#allocation14], %s2026_s28, %s2026_s28, %s2027_s27  }
  0x45   :  { %s2028_s22 = smov [#allocation2]   ;;  %s1902_s4 = scalar_lea.hbm %s2321_s1, 1024 }
  0x46   :  { %s30_s23 = sshll.u32 %s2028_s22, 4  ;;  %p1903_p4 = scmp.ne.s32.totalorder %s2321_s1, %s1902_s4  ;;  %s31_s23 = int_to_ptr.vmem [resolvable:$true] %s30_s23 }
  0x47   :  { %p1906_p5 = scmp.lt.u32.totalorder %s1902_s4, %s2321_s1 }
  0x49   :  { %p1908_p6 = pnand %p1906_p5, %p1903_p4 }
  0x4b   :  { %1911 = shalt.err (!%p1908_p6)
}
  0x4c   :  { %s1912_s26 = scalar_lea.vmem %s31_s23, 1024  ;;  %p1917_p8 = scmp.lt.s32.totalorder %s31_s23, %s31_s23 }
  0x4d   :  { %p1913_p7 = scmp.ne.s32.totalorder %s31_s23, %s1912_s26  ;;  %p1918_p9 = scmp.lt.s32.totalorder %s1912_s26, %s1912_s26 }
  0x4f   :  { %p1919_p10 = por %p1918_p9, %p1917_p8 }
  0x51   :  { %p1920_p11 = pnand %p1919_p10, %p1913_p7 }
  0x53   :  { %1923 = shalt.err (!%p1920_p11)
}
  0x54   :  { %s2029_s9 = smov 256   ;;  %s2030_s18 = smov 16  }
  0x55   :  { %36 = dma.hbm_to_vmem [thread:$0]  %s2321_s1, 1024, %s31_s23, [#allocation3], %s2029_s9, %s2029_s9, %s2030_s18  }
  0x56   :  { %s2031_s19 = smov [#allocation6]   ;;  %s1924_s16 = scalar_lea.hbm %s2323_s3, 8192 }
  0x57   :  { %s52_s20 = sshll.u32 %s2031_s19, 4  ;;  %p1925_p12 = scmp.ne.s32.totalorder %s2323_s3, %s1924_s16  ;;  %s53_s20 = int_to_ptr.vmem [resolvable:$true] %s52_s20 }
  0x58   :  { %p1928_p13 = scmp.lt.u32.totalorder %s1924_s16, %s2323_s3 }
  0x5a   :  { %p1930_p0 = pnand %p1928_p13, %p1925_p12 }
  0x5c   :  { %1933 = shalt.err (!%p1930_p0)
}
  0x5d   :  { %s1934_s29 = scalar_lea.vmem %s53_s20, 8192  ;;  %p1939_p2 = scmp.lt.s32.totalorder %s53_s20, %s53_s20 }
  0x5e   :  { %p1935_p1 = scmp.ne.s32.totalorder %s53_s20, %s1934_s29  ;;  %p1940_p3 = scmp.lt.s32.totalorder %s1934_s29, %s1934_s29 }
  0x60   :  { %p1941_p4 = por %p1940_p3, %p1939_p2 }
  0x62   :  { %p1942_p5 = pnand %p1941_p4, %p1935_p1 }
  0x64   :  { %1945 = shalt.err (!%p1942_p5)
}
  0x65   :  { %s2032_s1 = smov 128   ;;  %s2033_s23 = smov 8  }
  0x66   :  { %58 = dma.hbm_to_vmem [thread:$0]  %s2323_s3, 8192, %s53_s20, [#allocation5], %s2032_s1, %s2032_s1, %s2033_s23  }
  0x67   :  { %s2034_s2 = smov [#allocation9]   ;;  %s2035_s9 = smov [#allocation12]  }
  0x68   :  { %s74_s26 = sshll.u32 %s2034_s2, 4  ;;  %s101_s18 = sshll.u32 %s2035_s9, 4  ;;  %s75_s26 = int_to_ptr.vmem [resolvable:$true] %s74_s26  ;;  %s102_s18 = int_to_ptr.vmem [resolvable:$true] %s101_s18 }
  0x69   :  { %s1946_s19 = scalar_lea.hbm %s2325_s5, 2048 }
  0x6a   :  { %p1947_p6 = scmp.ne.s32.totalorder %s2325_s5, %s1946_s19  ;;  %p1950_p7 = scmp.lt.u32.totalorder %s1946_s19, %s2325_s5 }
  0x6c   :  { %p1952_p8 = pnand %p1950_p7, %p1947_p6 }
  0x6e   :  { %1955 = shalt.err (!%p1952_p8)
}
  0x6f   :  { %s1956_s3 = scalar_lea.vmem %s75_s26, 2048  ;;  %p1961_p10 = scmp.lt.s32.totalorder %s75_s26, %s75_s26 }
  0x70   :  { %p1957_p9 = scmp.ne.s32.totalorder %s75_s26, %s1956_s3  ;;  %p1962_p11 = scmp.lt.s32.totalorder %s1956_s3, %s1956_s3 }
  0x72   :  { %p1963_p12 = por %p1962_p11, %p1961_p10 }
  0x74   :  { %p1964_p13 = pnand %p1963_p12, %p1957_p9 }
  0x76   :  { %1967 = shalt.err (!%p1964_p13)
}
  0x77   :  { %80 = dma.hbm_to_vmem [thread:$0]  %s2325_s5, 2048, %s75_s26, [#allocation8], %s2026_s28, %s2026_s28, %s2027_s27  }
  0x78   :  { %s1968_s29 = scalar_lea.hbm %s2328_s8, 16 }
  0x79   :  { %p1969_p0 = scmp.ne.s32.totalorder %s2328_s8, %s1968_s29  ;;  %p1972_p1 = scmp.lt.u32.totalorder %s1968_s29, %s2328_s8 }
  0x7b   :  { %p1974_p2 = pnand %p1972_p1, %p1969_p0 }
  0x7d   :  { %1977 = shalt.err (!%p1974_p2)
}
  0x7e   :  { %s1978_s2 = scalar_lea.vmem %s102_s18, 16  ;;  %s1982_s9 = scalar_lea.vmem %s102_s18, 32 }
  0x7f   :  { %p1979_p3 = scmp.ne.s32.totalorder %s102_s18, %s1978_s2  ;;  %p1983_p4 = scmp.lt.s32.totalorder %s102_s18, %s102_s18 }
  0x80   :  { %p1984_p5 = scmp.lt.s32.totalorder %s1982_s9, %s1978_s2 }
  0x82   :  { %p1985_p6 = por %p1984_p5, %p1983_p4 }
  0x84   :  { %p1986_p7 = pnand %p1985_p6, %p1979_p3 }
  0x86   :  { %1989 = shalt.err (!%p1986_p7)
}
  0x87   :  { %104 = dma.hbm_to_vmem [thread:$0]  %s2328_s8, 16, %s102_s18, [#allocation11]  }
  0x88   :  { %s2036_s27 = smov [#allocation15]   ;;  %s1990_s19 = scalar_lea.hbm %s2330_s10, 16 }
  0x89   :  { %s123_s26 = sshll.u32 %s2036_s27, 4  ;;  %p1991_p8 = scmp.ne.s32.totalorder %s2330_s10, %s1990_s19  ;;  %s124_s26 = int_to_ptr.vmem [resolvable:$true] %s123_s26 }
  0x8a   :  { %p1994_p9 = scmp.lt.u32.totalorder %s1990_s19, %s2330_s10 }
  0x8c   :  { %p1996_p10 = pnand %p1994_p9, %p1991_p8 }
  0x8e   :  { %1999 = shalt.err (!%p1996_p10)
}
  0x8f   :  { %s2000_s3 = scalar_lea.vmem %s124_s26, 16  ;;  %s2004_s8 = scalar_lea.vmem %s124_s26, 32 }
  0x90   :  { %p2001_p11 = scmp.ne.s32.totalorder %s124_s26, %s2000_s3  ;;  %p2005_p12 = scmp.lt.s32.totalorder %s124_s26, %s124_s26 }
  0x91   :  { %p2006_p13 = scmp.lt.s32.totalorder %s2004_s8, %s2000_s3 }
  0x93   :  { %p2007_p0 = por %p2006_p13, %p2005_p12 }
  0x95   :  { %p2008_p1 = pnand %p2007_p0, %p2001_p11 }
  0x97   :  { %2011 = shalt.err (!%p2008_p1)
}
  0x98   :  { %126 = dma.hbm_to_vmem [thread:$0]  %s2330_s10, 16, %s124_s26, [#allocation14]  }
  0x99   :  { %2012 = dma.done.wait [#allocation3], 1024  }
  0x9a   :  { %2013 = vsyncadd [#allocation3], 4294966272 }
  0x9b   :  { %2014 = dma.done.wait [#allocation5], 8256  }
  0x9c   :  { %2015 = vsyncadd [#allocation5], 4294959040 }
  0x9d   :  { %2016 = dma.done.wait [#allocation8], 2080  }
  0x9e   :  { %2017 = vsyncadd [#allocation8], 4294965216 }
  0x9f   :  { %2018 = dma.done.wait [#allocation11], 1040  }
  0xa0   :  { %2019 = vsyncadd [#allocation11], 4294966256 }
  0xa1   :  { %2020 = dma.done.wait [#allocation14], 1040  }
  0xa2   :  { %2021 = vsyncadd [#allocation14], 4294966256  ;;  %v2037_v0 = vmov 0   ;;  %v1629_v1 = vld [vmem:[#allocation2 + $0x4] ss:$16 sps:$4 sm:$0xff]   ;;  %vm236_vm0 = vcmask 261120   ;;  %v171_v49 = vlaneseq }
  0xa3   :  { %272 = vmatprep.mubr.bf16.mxu0 %v2037_v0  ;;  %315 = vmatprep.mubr.bf16.mxu1 %v2037_v0  ;;  %v1631_v2 = vld [vmem:[#allocation2] ss:$16 sps:$4 sm:$0xff]   ;;  %v1632_v3 = vld [vmem:[#allocation2 + $0x24] ss:$16 sps:$4 sm:$0xff]   ;;  %v1636_v6 = vld [vmem:[#allocation2 + $0xc] ss:$16 sps:$4 sm:$0xff]  }
  0xa4   :  { %240 = vmatprep.subr.bf16.mxu0 %v1629_v1  ;;  %v1634_v4 = vld [vmem:[#allocation2 + $0x20] ss:$16 sps:$4 sm:$0xff]   ;;  %v1638_v7 = vld [vmem:[#allocation2 + $0x8] ss:$16 sps:$4 sm:$0xff]   ;;  %v1639_v8 = vld [vmem:[#allocation2 + $0x2c] ss:$16 sps:$4 sm:$0xff]   ;;  %283 = vmatprep.subr.bf16.mxu1 %v1636_v6 }
  0xa5   :  { %241 = vmatpush1.bf16.msra.mxu0 %v1631_v2  ;;  %v1635_v5 = vld [vmem:[%s2320_s0] sm:$0xff]   ;;  %v1641_v9 = vld [vmem:[#allocation2 + $0x28] ss:$16 sps:$4 sm:$0xff]   ;;  %284 = vmatpush1.bf16.msra.mxu1 %v1638_v7  ;;  %v1645_v13 = vld [vmem:[#allocation6 + $0x10] ss:$8 sps:$4 sm:$0xff]   ;;  %v2237_v50 = vshrl.u32 %v171_v49, 7 }
  0xa6   :  { %242 = vmatprep.subr.bf16.mxu0 %v1632_v3  ;;  %v1642_v10 = vld [vmem:[#allocation6] ss:$8 sps:$4 sm:$0xff]   ;;  %v1644_v11 = vld [vmem:[#allocation6 + $0x4] ss:$8 sps:$4 sm:$0xff]   ;;  %285 = vmatprep.subr.bf16.mxu1 %v1639_v8  ;;  %v1647_v12 = vld [vmem:[#allocation6 + $0x14] ss:$8 sps:$4 sm:$0xff]  }
  0xa7   :  { %v1650_v14 = vld [vmem:[#allocation6 + $0x24] ss:$8 sps:$4 sm:$0xff]   ;;  %v1648_v15 = vld [vmem:[#allocation6 + $0x20] ss:$8 sps:$4 sm:$0xff]   ;;  %v1653_v16 = vld [vmem:[#allocation6 + $0x34] ss:$8 sps:$4 sm:$0xff]  }
  0xa8   :  { %v1651_v17 = vld [vmem:[#allocation6 + $0x30] ss:$8 sps:$4 sm:$0xff]   ;;  %v1656_v18 = vld [vmem:[#allocation6 + $0x44] ss:$8 sps:$4 sm:$0xff]   ;;  %v1654_v19 = vld [vmem:[#allocation6 + $0x40] ss:$8 sps:$4 sm:$0xff]  }
  0xa9   :  { %243 = vmatpush1.bf16.msra.mxu0 %v1634_v4  ;;  %286 = vmatpush1.bf16.msra.mxu1 %v1641_v9  ;;  %v1659_v20 = vld [vmem:[#allocation6 + $0x54] ss:$8 sps:$4 sm:$0xff]   ;;  %v1657_v21 = vld [vmem:[#allocation6 + $0x50] ss:$8 sps:$4 sm:$0xff]   ;;  %v1662_v22 = vld [vmem:[#allocation6 + $0x64] ss:$8 sps:$4 sm:$0xff]  }
  0xaa   :  { %734 = vmatprep.subr.bf16.mxu0 %v1644_v11  ;;  %v1660_v23 = vld [vmem:[#allocation6 + $0x60] ss:$8 sps:$4 sm:$0xff]   ;;  %v1665_v24 = vld [vmem:[#allocation6 + $0x74] ss:$8 sps:$4 sm:$0xff]   ;;  %v1663_v25 = vld [vmem:[#allocation6 + $0x70] ss:$8 sps:$4 sm:$0xff]  }
  0xab   :  { %v1668_v26 = vld [vmem:[#allocation6 + $0x84] ss:$8 sps:$4 sm:$0xff]   ;;  %v1666_v27 = vld [vmem:[#allocation6 + $0x80] ss:$8 sps:$4 sm:$0xff]   ;;  %v1671_v28 = vld [vmem:[#allocation6 + $0x94] ss:$8 sps:$4 sm:$0xff]  }
  0xac   :  { %1375 = vmatmul.mubr.msk.bf16.vlgmr.msra.gmra.mrb[0].mxu0 %vm236_vm0, %v1635_v5  ;;  %1376 = vmatmul.mubr.msk.bf16.vlgmr.msra.gmra.mrb[0].mxu1 %vm236_vm0, %v1635_v5  ;;  %v1669_v29 = vld [vmem:[#allocation6 + $0x90] ss:$8 sps:$4 sm:$0xff]   ;;  %v1674_v30 = vld [vmem:[#allocation6 + $0xa4] ss:$8 sps:$4 sm:$0xff]   ;;  %v1672_v31 = vld [vmem:[#allocation6 + $0xa0] ss:$8 sps:$4 sm:$0xff]  }
  0xad   :  { %735 = vmatpush1.bf16.msra.mxu0 %v1642_v10  ;;  %v1677_v32 = vld [vmem:[#allocation6 + $0xb4] ss:$8 sps:$4 sm:$0xff]   ;;  %v1675_v33 = vld [vmem:[#allocation6 + $0xb0] ss:$8 sps:$4 sm:$0xff]   ;;  %v1680_v34 = vld [vmem:[#allocation6 + $0xc4] ss:$8 sps:$4 sm:$0xff]  }
  0xae   :  { %736 = vmatprep.subr.bf16.mxu0 %v1647_v12  ;;  %v1678_v35 = vld [vmem:[#allocation6 + $0xc0] ss:$8 sps:$4 sm:$0xff]   ;;  %v1683_v36 = vld [vmem:[#allocation6 + $0xd4] ss:$8 sps:$4 sm:$0xff]   ;;  %v1681_v37 = vld [vmem:[#allocation6 + $0xd0] ss:$8 sps:$4 sm:$0xff]  }
  0xaf   :  { %v1686_v38 = vld [vmem:[#allocation6 + $0xe4] ss:$8 sps:$4 sm:$0xff]   ;;  %v1684_v39 = vld [vmem:[#allocation6 + $0xe0] ss:$8 sps:$4 sm:$0xff]   ;;  %v1689_v40 = vld [vmem:[#allocation6 + $0xf4] ss:$8 sps:$4 sm:$0xff]  }
  0xb0   :  { %v1687_v41 = vld [vmem:[#allocation6 + $0xf0] ss:$8 sps:$4 sm:$0xff]   ;;  %v1692_v42 = vld [vmem:[#allocation6 + $0x104] ss:$8 sps:$4 sm:$0xff]   ;;  %v173_v51 = vsub.s32 0, %v2237_v50  ;;  %v177_v53 = vsub.s32 1, %v2237_v50 }
  0xb1   :  { %737 = vmatpush1.bf16.msra.mxu0 %v1645_v13  ;;  %v1738_v43 = vld [vmem:[#allocation9 + $0x40] sm:$0xff]   ;;  %v1740_v45 = vld [vmem:[#allocation9 + $0x48] sm:$0xff]   ;;  %v1742_v47 = vld [vmem:[#allocation9 + $0x50] sm:$0xff]   ;;  %v181_v55 = vsub.s32 2, %v2237_v50  ;;  %v185_v57 = vsub.s32 3, %v2237_v50  ;;  %vm2039_vm1 = vmmov 0  }
  0xb2   :  { %738 = vmatprep.subr.bf16.mxu0 %v1650_v14  ;;  %v1739_v44 = vld [vmem:[#allocation9] sm:$0xff]   ;;  %1494 = vmatprep.subr.bf16.mxu1 %v1738_v43  ;;  %v1741_v46 = vld [vmem:[#allocation9 + $0x8] sm:$0xff]   ;;  %v1743_v48 = vld [vmem:[#allocation9 + $0x10] sm:$0xff]  }
  0xb3   :  { %1495 = vmatpush3.bf16.msra.mxu1 %v1739_v44  ;;  %v169_v52 = vld [vmem:[#allocation4] sm:$0xf]  ;;  %v1722_v43 = vld [vmem:[#allocation6 + $0x1a4] ss:$8 sps:$4 sm:$0xff]   ;;  %v1720_v44 = vld [vmem:[#allocation6 + $0x1a0] ss:$8 sps:$4 sm:$0xff]  }
  0xb4   :  { %1496 = vmatprep.subr.bf16.mxu1 %v1740_v45  ;;  %v174_v54 = vrot.slane %v169_v52, %v173_v51  ;;  %v178_v56 = vrot.slane %v169_v52, %v177_v53  ;;  %v182_v61 = vrot.slane %v169_v52, %v181_v55  ;;  %v186_v0 = vrot.slane %v169_v52, %v185_v57  ;;  %v1725_v45 = vld [vmem:[#allocation6 + $0x1b4] ss:$8 sps:$4 sm:$0xff]   ;;  %v1729_v52 = vld [vmem:[#allocation6 + $0x1d0] ss:$8 sps:$4 sm:$0xff]   ;;  %v1732_v55 = vld [vmem:[#allocation6 + $0x1e0] ss:$8 sps:$4 sm:$0xff]  }
  0xb5   :  { %739 = vmatpush1.bf16.msra.mxu0 %v1648_v15  ;;  %v1731_v49 = vld [vmem:[#allocation6 + $0x1d4] ss:$8 sps:$4 sm:$0xff]   ;;  %v1735_v57 = vld [vmem:[#allocation6 + $0x1f0] ss:$8 sps:$4 sm:$0xff]   ;;  %v1754_v50 = vld [vmem:[#allocation10] sm:$0xff]  }
  0xb6   :  { %740 = vmatprep.subr.bf16.mxu0 %v1653_v16 }
  0xb7   :  { %1497 = vmatpush3.bf16.msra.mxu1 %v1741_v46  ;;  %v1723_v46 = vld [vmem:[#allocation6 + $0x1b0] ss:$8 sps:$4 sm:$0xff]  }
  0xb8   :  { %1498 = vmatprep.subr.bf16.mxu1 %v1742_v47  ;;  %v1728_v47 = vld [vmem:[#allocation6 + $0x1c4] ss:$8 sps:$4 sm:$0xff]  }
  0xb9   :  { %741 = vmatpush1.bf16.msra.mxu0 %v1651_v17 }
  0xba   :  { %742 = vmatprep.subr.bf16.mxu0 %v1656_v18 }
  0xbb   :  { %1499 = vmatpush3.bf16.msra.mxu1 %v1743_v48  ;;  %v1726_v48 = vld [vmem:[#allocation6 + $0x1c0] ss:$8 sps:$4 sm:$0xff]  }
  0xbd   :  { %743 = vmatpush1.bf16.msra.mxu0 %v1654_v19  ;;  %v1690_v19 = vld [vmem:[#allocation6 + $0x100] ss:$8 sps:$4 sm:$0xff]  }
  0xbe   :  { %744 = vmatprep.subr.bf16.mxu0 %v1659_v20 }
  0xc1   :  { %745 = vmatpush1.bf16.msra.mxu0 %v1657_v21  ;;  %v1695_v21 = vld [vmem:[#allocation6 + $0x114] ss:$8 sps:$4 sm:$0xff]  }
  0xc2   :  { %746 = vmatprep.subr.bf16.mxu0 %v1662_v22 }
  0xc5   :  { %747 = vmatpush1.bf16.msra.mxu0 %v1660_v23 }
  0xc6   :  { %748 = vmatprep.subr.bf16.mxu0 %v1665_v24 }
  0xc9   :  { %749 = vmatpush1.bf16.msra.mxu0 %v1663_v25  ;;  %v1693_v25 = vld [vmem:[#allocation6 + $0x110] ss:$8 sps:$4 sm:$0xff]  }
  0xca   :  { %750 = vmatprep.subr.bf16.mxu0 %v1668_v26 }
  0xcd   :  { %751 = vmatpush1.bf16.msra.mxu0 %v1666_v27  ;;  %v1698_v27 = vld [vmem:[#allocation6 + $0x124] ss:$8 sps:$4 sm:$0xff]  }
  0xce   :  { %752 = vmatprep.subr.bf16.mxu0 %v1671_v28  ;;  %v1696_v28 = vld [vmem:[#allocation6 + $0x120] ss:$8 sps:$4 sm:$0xff]  }
  0xd1   :  { %753 = vmatpush1.bf16.msra.mxu0 %v1669_v29  ;;  %v1701_v29 = vld [vmem:[#allocation6 + $0x134] ss:$8 sps:$4 sm:$0xff]  }
  0xd2   :  { %754 = vmatprep.subr.bf16.mxu0 %v1674_v30  ;;  %v1699_v30 = vld [vmem:[#allocation6 + $0x130] ss:$8 sps:$4 sm:$0xff]  }
  0xd5   :  { %755 = vmatpush1.bf16.msra.mxu0 %v1672_v31  ;;  %v1704_v31 = vld [vmem:[#allocation6 + $0x144] ss:$8 sps:$4 sm:$0xff]  }
  0xd6   :  { %756 = vmatprep.subr.bf16.mxu0 %v1677_v32  ;;  %v1702_v32 = vld [vmem:[#allocation6 + $0x140] ss:$8 sps:$4 sm:$0xff]  }
  0xd9   :  { %757 = vmatpush1.bf16.msra.mxu0 %v1675_v33  ;;  %v1707_v33 = vld [vmem:[#allocation6 + $0x154] ss:$8 sps:$4 sm:$0xff]  }
  0xda   :  { %758 = vmatprep.subr.bf16.mxu0 %v1680_v34  ;;  %v1705_v34 = vld [vmem:[#allocation6 + $0x150] ss:$8 sps:$4 sm:$0xff]  }
  0xdd   :  { %759 = vmatpush1.bf16.msra.mxu0 %v1678_v35  ;;  %v1710_v35 = vld [vmem:[#allocation6 + $0x164] ss:$8 sps:$4 sm:$0xff]  }
  0xde   :  { %760 = vmatprep.subr.bf16.mxu0 %v1683_v36  ;;  %v1708_v36 = vld [vmem:[#allocation6 + $0x160] ss:$8 sps:$4 sm:$0xff]  }
  0xe1   :  { %761 = vmatpush1.bf16.msra.mxu0 %v1681_v37  ;;  %v1713_v37 = vld [vmem:[#allocation6 + $0x174] ss:$8 sps:$4 sm:$0xff]  }
  0xe2   :  { %762 = vmatprep.subr.bf16.mxu0 %v1686_v38  ;;  %v1711_v38 = vld [vmem:[#allocation6 + $0x170] ss:$8 sps:$4 sm:$0xff]  }
  0xe5   :  { %763 = vmatpush1.bf16.msra.mxu0 %v1684_v39  ;;  %v1716_v39 = vld [vmem:[#allocation6 + $0x184] ss:$8 sps:$4 sm:$0xff]  }
  0xe6   :  { %764 = vmatprep.subr.bf16.mxu0 %v1689_v40  ;;  %v1714_v40 = vld [vmem:[#allocation6 + $0x180] ss:$8 sps:$4 sm:$0xff]  }
  0xe9   :  { %765 = vmatpush1.bf16.msra.mxu0 %v1687_v41  ;;  %v1719_v41 = vld [vmem:[#allocation6 + $0x194] ss:$8 sps:$4 sm:$0xff]  }
  0xea   :  { %777 = vmatprep.subr.bf16.mxu0 %v1692_v42  ;;  %v1717_v42 = vld [vmem:[#allocation6 + $0x190] ss:$8 sps:$4 sm:$0xff]  }
 0x17f   :  { %v274_v58 = vpop.f32.mrb[0].mxu0  ;;  %v317_v4 = vpop.f32.mrb[0].mxu1 }
 0x180   :  { %v275_v59 = vadd.f32 %v274_v58, %v174_v54  ;;  %v276_v60 = vpop.f32.mrb[1].mxu0  ;;  %v318_v5 = vadd.f32 %v317_v4, %v182_v61  ;;  %v319_v6 = vpop.f32.mrb[1].mxu1  ;;  %v1744_v58 = vld [vmem:[#allocation9 + $0x58] sm:$0xff]   ;;  %v2038_v4 = vmov 0.0  }
 0x181   :  { %v277_v62 = vadd.f32 %v276_v60, %v178_v56  ;;  %v278_v63 = vpop.f32.mrb[2].mxu0  ;;  %v320_v7 = vadd.f32 %v319_v6, %v186_v0  ;;  %v321_v8 = vpop.f32.mrb[2].mxu1  ;;  %1500 = vmatprep.subr.bf16.mxu1 %v1744_v58  ;;  %v1746_v60 = vld [vmem:[#allocation9 + $0x60] sm:$0xff]  }
 0x182   :  { %1778 = vtanh.f32 %v275_v59  ;;  %v279_v1 = vadd.f32 %v278_v63, %v174_v54  ;;  %v280_v2 = vpop.f32.mrb[3].mxu0  ;;  %v322_v9 = vadd.f32 %v321_v8, %v182_v61  ;;  %v323_v10 = vpop.f32.mrb[3].mxu1  ;;  %v1734_v54 = vld [vmem:[#allocation6 + $0x1e4] ss:$8 sps:$4 sm:$0xff]   ;;  %v1745_v59 = vld [vmem:[#allocation9 + $0x18] sm:$0xff]  }
 0x183   :  { %1780 = vtanh.f32 %v277_v62  ;;  %v281_v3 = vadd.f32 %v280_v2, %v178_v56  ;;  %v324_v11 = vadd.f32 %v323_v10, %v186_v0  ;;  %v1737_v56 = vld [vmem:[#allocation6 + $0x1f4] ss:$8 sps:$4 sm:$0xff]   ;;  %1501 = vmatpush3.bf16.msra.mxu1 %v1745_v59  ;;  %v1747_v61 = vld [vmem:[#allocation9 + $0x20] sm:$0xff]   ;;  %v1748_v62 = vld [vmem:[#allocation9 + $0x68] sm:$0xff]  }
 0x184   :  { %1782 = vtanh.f32 %v279_v1  ;;  %1502 = vmatprep.subr.bf16.mxu1 %v1746_v60  ;;  %v1749_v63 = vld [vmem:[#allocation9 + $0x28] sm:$0xff]   ;;  %v1750_v0 = vld [vmem:[#allocation9 + $0x70] sm:$0xff]   ;;  %v1752_v2 = vld [vmem:[#allocation9 + $0x78] sm:$0xff]  }
 0x185   :  { %1784 = vtanh.f32 %v281_v3  ;;  %v1751_v1 = vld [vmem:[#allocation9 + $0x30] sm:$0xff]   ;;  %v1753_v3 = vld [vmem:[#allocation9 + $0x38] sm:$0xff]  }
 0x186   :  { %1786 = vtanh.f32 %v318_v5  ;;  %v402_v5 = vld [vmem:[#allocation7] sm:$0x3] }
 0x187   :  { %1788 = vtanh.f32 %v320_v7  ;;  %1503 = vmatpush3.bf16.msra.mxu1 %v1747_v61  ;;  %v407_v6 = vrot.slane %v402_v5, %v173_v51  ;;  %v411_v7 = vrot.slane %v402_v5, %v177_v53  ;;  %v1755_v53 = vld [vmem:[#allocation10 + $0x8] sm:$0xff]   ;;  %v1770_v59 = vld [vmem:[%s2331_s11] sm:$0xff]   ;;  %v1467_v5 = vld [vmem:[#allocation15] ss:$0 sm:$0xff] }
 0x188   :  { %1790 = vtanh.f32 %v322_v9  ;;  %1504 = vmatprep.subr.bf16.mxu1 %v1748_v62  ;;  %v1771_v61 = vld [vmem:[%s2331_s11 + $0x8] sm:$0xff]   ;;  %v1772_v62 = vld [vmem:[%s2331_s11 + $0x10] sm:$0xff]  }
 0x189   :  { %1792 = vtanh.f32 %v324_v11 }
 0x18b   :  { %1505 = vmatpush3.bf16.msra.mxu1 %v1749_v63  ;;  %v1773_v63 = vld [vmem:[%s2331_s11 + $0x18] sm:$0xff]  }
 0x18c   :  { %v1779_v12 = vpop.eup %1778  ;;  %1506 = vmatprep.subr.bf16.mxu1 %v1750_v0  ;;  %v1774_v0 = vld [vmem:[%s2331_s11 + $0x20] sm:$0xff]  }
 0x18d   :  { %v1781_v13 = vpop.eup %1780 }
 0x18e   :  { %v1783_v14 = vpop.eup %1782 }
 0x18f   :  { %v1785_v15 = vpop.eup %1784  ;;  %v334_v16 = vpack.c.bf16 %v1783_v14, %v1779_v12  ;;  %1507 = vmatpush3.bf16.msra.mxu1 %v1751_v1  ;;  %v1775_v1 = vld [vmem:[%s2331_s11 + $0x28] sm:$0xff]  }
 0x190   :  { %v2247_v17 = vpop.eup %1786  ;;  %v335_v18 = vpack.c.bf16 %v1785_v15, %v1781_v13  ;;  %1508 = vmatprep.subr.bf16.mxu1 %v1752_v2  ;;  %v1776_v2 = vld [vmem:[%s2331_s11 + $0x30] sm:$0xff]  }
 0x191   :  { %v1789_v20 = vpop.eup %1788 }
 0x192   :  { %v2249_v22 = vpop.eup %1790  ;;  %766 = vmatprep.mubr.bf16.mxu0 %v335_v18 }
 0x193   :  { %v1793_v23 = vpop.eup %1792  ;;  %767 = vmatmul.mubr.bf16.vlgmr.msra.gmra.mrb[4].mxu0 %v334_v16  ;;  %v336_v24 = vpack.c.bf16 %v2249_v22, %v2247_v17  ;;  %1509 = vmatpush3.bf16.msra.mxu1 %v1753_v3  ;;  %v1757_v22 = vld [vmem:[#allocation10 + $0x18] sm:$0xff]  }
 0x194   :  { %778 = vmatpush1.bf16.msra.mxu0 %v1690_v19  ;;  %v337_v26 = vpack.c.bf16 %v1793_v23, %v1789_v20  ;;  %1543 = vmatprep.subr.bf16.mxu1 %v2038_v4  ;;  %v1758_v23 = vld [vmem:[#allocation10 + $0x20] sm:$0xff]   ;;  %v1777_v3 = vld [vmem:[%s2331_s11 + $0x38] sm:$0xff]  }
 0x195   :  { %779 = vmatprep.subr.bf16.mxu0 %v1695_v21  ;;  %v1756_v21 = vld [vmem:[#allocation10 + $0x10] sm:$0xff]  }
 0x196   :  { %809 = vmatprep.mubr.bf16.mxu0 %v337_v26  ;;  %v1761_v26 = vld [vmem:[#allocation10 + $0x38] sm:$0xff]  }
 0x198   :  { %780 = vmatpush1.bf16.msra.mxu0 %v1693_v25  ;;  %v1760_v25 = vld [vmem:[#allocation10 + $0x30] sm:$0xff]  }
 0x199   :  { %781 = vmatprep.subr.bf16.mxu0 %v1698_v27 }
 0x19c   :  { %782 = vmatpush1.bf16.msra.mxu0 %v1696_v28  ;;  %v1441_v28 = vld [vmem:[%s2326_s6] ss:$0 sm:$0xff] }
 0x19d   :  { %783 = vmatprep.subr.bf16.mxu0 %v1701_v29 }
 0x1a0   :  { %784 = vmatpush1.bf16.msra.mxu0 %v1699_v30 }
 0x1a1   :  { %785 = vmatprep.subr.bf16.mxu0 %v1704_v31 }
 0x1a4   :  { %786 = vmatpush1.bf16.msra.mxu0 %v1702_v32 }
 0x1a5   :  { %787 = vmatprep.subr.bf16.mxu0 %v1707_v33 }
 0x1a8   :  { %788 = vmatpush1.bf16.msra.mxu0 %v1705_v34 }
 0x1a9   :  { %789 = vmatprep.subr.bf16.mxu0 %v1710_v35 }
 0x1ac   :  { %790 = vmatpush1.bf16.msra.mxu0 %v1708_v36 }
 0x1ad   :  { %791 = vmatprep.subr.bf16.mxu0 %v1713_v37 }
 0x1b0   :  { %792 = vmatpush1.bf16.msra.mxu0 %v1711_v38  ;;  %v1762_v38 = vld [vmem:[#allocation13] sm:$0xff]  }
 0x1b1   :  { %793 = vmatprep.subr.bf16.mxu0 %v1716_v39 }
 0x1b4   :  { %794 = vmatpush1.bf16.msra.mxu0 %v1714_v40  ;;  %v1763_v40 = vld [vmem:[#allocation13 + $0x8] sm:$0xff]  }
 0x1b5   :  { %795 = vmatprep.subr.bf16.mxu0 %v1719_v41  ;;  %v1764_v41 = vld [vmem:[#allocation13 + $0x10] sm:$0xff]  }
 0x1b8   :  { %796 = vmatpush1.bf16.msra.mxu0 %v1717_v42  ;;  %v1765_v42 = vld [vmem:[#allocation13 + $0x18] sm:$0xff]  }
 0x1b9   :  { %797 = vmatprep.subr.bf16.mxu0 %v1722_v43  ;;  %v1766_v43 = vld [vmem:[#allocation13 + $0x20] sm:$0xff]  }
 0x1bc   :  { %798 = vmatpush1.bf16.msra.mxu0 %v1720_v44  ;;  %v1767_v44 = vld [vmem:[#allocation13 + $0x28] sm:$0xff]  }
 0x1bd   :  { %799 = vmatprep.subr.bf16.mxu0 %v1725_v45  ;;  %v1768_v45 = vld [vmem:[#allocation13 + $0x30] sm:$0xff]  }
 0x1c0   :  { %800 = vmatpush1.bf16.msra.mxu0 %v1723_v46  ;;  %v1769_v46 = vld [vmem:[#allocation13 + $0x38] sm:$0xff]  }
 0x1c1   :  { %801 = vmatprep.subr.bf16.mxu0 %v1728_v47  ;;  %v1458_v47 = vld [vmem:[#allocation12] ss:$0 sm:$0xff] }
 0x1c4   :  { %802 = vmatpush1.bf16.msra.mxu0 %v1726_v48 }
 0x1c5   :  { %803 = vmatprep.subr.bf16.mxu0 %v1731_v49 }
 0x1c8   :  { %804 = vmatpush1.bf16.msra.mxu0 %v1729_v52 }
 0x1c9   :  { %805 = vmatprep.subr.bf16.mxu0 %v1734_v54 }
 0x1cc   :  { %806 = vmatpush1.bf16.msra.mxu0 %v1732_v55 }
 0x1cd   :  { %807 = vmatprep.subr.bf16.mxu0 %v1737_v56 }
 0x1d0   :  { %808 = vmatpush1.bf16.msra.mxu0 %v1735_v57 }
 0x1d3   :  { %810 = vmatmul.mubr.bf16.vlgmr.msra.gmra.mrb[4].mxu0 %v336_v24  ;;  %v1759_v24 = vld [vmem:[#allocation10 + $0x28] sm:$0xff]  }
 0x2a6   :  { %v811_v8 = vpop.f32.mrb[4].mxu0 }
 0x2a7   :  { %v1603_v9 = vadd.f32 %v811_v8, %v407_v6  ;;  %v813_v10 = vpop.f32.mrb[5].mxu0 }
 0x2a8   :  { %v1604_v11 = vadd.f32 %v813_v10, %v411_v7  ;;  %v815_v12 = vpop.f32.mrb[6].mxu0 }
 0x2a9   :  { %1794 = vtanh.f32 %v1603_v9  ;;  %v1605_v13 = vadd.f32 %v815_v12, %v407_v6  ;;  %v817_v14 = vpop.f32.mrb[7].mxu0 }
 0x2aa   :  { %1796 = vtanh.f32 %v1604_v11  ;;  %v1606_v15 = vadd.f32 %v817_v14, %v411_v7 }
 0x2ab   :  { %1798 = vtanh.f32 %v1605_v13 }
 0x2ac   :  { %1800 = vtanh.f32 %v1606_v15  ;;  %v1476_v15 = vld [vmem:[%s2332_s12] ss:$0 sm:$0xff] }
 0x2b3   :  { %v1795_v16 = vpop.eup %1794 }
 0x2b4   :  { %v1797_v17 = vpop.eup %1796 }
 0x2b5   :  { %v1799_v18 = vpop.eup %1798 }
 0x2b6   :  { %v1801_v19 = vpop.eup %1800  ;;  %v824_v51 = vpack.c.bf16 %v1799_v18, %v1795_v16 }
 0x2b7   :  { %v825_v20 = vpack.c.bf16 %v1801_v19, %v1797_v17 }
 0x2b9   :  { %993 = vmatprep.mubr.bf16.mxu1 %v825_v20 }
 0x2ba   :  { %994 = vmatmul.mubr.bf16.vlgmr.msra.gmra.mrb[4].mxu1 %v824_v51 }
 0x2bb   :  { %1544 = vmatpush3.bf16.msra.mxu1 %v1754_v50  ;;  %1559 = vmatprep.mubr.msk.bf16.mxu1 %vm2039_vm1, %v2038_v4 }
 0x2bc   :  { %1545 = vmatprep.subr.bf16.mxu1 %v2038_v4 }
 0x2bf   :  { %1546 = vmatpush3.bf16.msra.mxu1 %v1755_v53 }
 0x2c0   :  { %1547 = vmatprep.subr.bf16.mxu1 %v2038_v4 }
 0x2c3   :  { %1548 = vmatpush3.bf16.msra.mxu1 %v1756_v21 }
 0x2c4   :  { %1549 = vmatprep.subr.bf16.mxu1 %v2038_v4 }
 0x2c7   :  { %1550 = vmatpush3.bf16.msra.mxu1 %v1757_v22 }
 0x2c8   :  { %1551 = vmatprep.subr.bf16.mxu1 %v2038_v4 }
 0x2cb   :  { %1552 = vmatpush3.bf16.msra.mxu1 %v1758_v23 }
 0x2cc   :  { %1553 = vmatprep.subr.bf16.mxu1 %v2038_v4 }
 0x2cf   :  { %1554 = vmatpush3.bf16.msra.mxu1 %v1759_v24 }
 0x2d0   :  { %1555 = vmatprep.subr.bf16.mxu1 %v2038_v4 }
 0x2d3   :  { %1556 = vmatpush3.bf16.msra.mxu1 %v1760_v25 }
 0x2d4   :  { %1557 = vmatprep.subr.bf16.mxu1 %v2038_v4 }
 0x2d7   :  { %1558 = vmatpush3.bf16.msra.mxu1 %v1761_v26 }
 0x2d8   :  { %1563 = vmatprep.subr.bf16.mxu1 %v2038_v4 }
 0x38d   :  { %v1510_v27 = vpop.f32.mrb[4].mxu1 }
 0x38e   :  { %v1511_v29 = vpop.f32.mrb[5].mxu1 }
 0x38f   :  { %v1512_v30 = vadd.f32 %v1511_v29, %v1510_v27  ;;  %v1513_v31 = vpop.f32.mrb[6].mxu1 }
 0x390   :  { %v1514_v32 = vpop.f32.mrb[7].mxu1 }
 0x391   :  { %v996_v33 = vadd.f32 %v1512_v30, %v1441_v28  ;;  %v1515_v34 = vadd.f32 %v1514_v32, %v1513_v31 }
 0x393   :  { %v999_v35 = vadd.f32 %v1515_v34, %v1441_v28  ;;  %1802 = vtanh.f32 %v996_v33 }
 0x395   :  { %1804 = vtanh.f32 %v999_v35 }
 0x39d   :  { %v1803_v36 = vpop.eup %1802 }
 0x39f   :  { %v1805_v37 = vpop.eup %1804 }
 0x3a0   :  { %v1004_v39 = vpack.c.bf16 %v1805_v37, %v1803_v36 }
 0x3a2   :  { %1560 = vmatmul.mubr.bf16.vlgmr.msra.gmra.mrb[8].mxu1 %v1004_v39 }
 0x3a3   :  { %1564 = vmatpush3.bf16.msra.mxu1 %v1762_v38  ;;  %1579 = vmatprep.mubr.msk.bf16.mxu1 %vm2039_vm1, %v2038_v4 }
 0x3a4   :  { %1565 = vmatprep.subr.bf16.mxu1 %v2038_v4 }
 0x3a7   :  { %1566 = vmatpush3.bf16.msra.mxu1 %v1763_v40 }
 0x3a8   :  { %1567 = vmatprep.subr.bf16.mxu1 %v2038_v4 }
 0x3ab   :  { %1568 = vmatpush3.bf16.msra.mxu1 %v1764_v41 }
 0x3ac   :  { %1569 = vmatprep.subr.bf16.mxu1 %v2038_v4 }
 0x3af   :  { %1570 = vmatpush3.bf16.msra.mxu1 %v1765_v42 }
 0x3b0   :  { %1571 = vmatprep.subr.bf16.mxu1 %v2038_v4 }
 0x3b3   :  { %1572 = vmatpush3.bf16.msra.mxu1 %v1766_v43 }
 0x3b4   :  { %1573 = vmatprep.subr.bf16.mxu1 %v2038_v4 }
 0x3b7   :  { %1574 = vmatpush3.bf16.msra.mxu1 %v1767_v44 }
 0x3b8   :  { %1575 = vmatprep.subr.bf16.mxu1 %v2038_v4 }
 0x3bb   :  { %1576 = vmatpush3.bf16.msra.mxu1 %v1768_v45 }
 0x3bc   :  { %1577 = vmatprep.subr.bf16.mxu1 %v2038_v4 }
 0x3bf   :  { %1578 = vmatpush3.bf16.msra.mxu1 %v1769_v46 }
 0x3c0   :  { %1583 = vmatprep.subr.bf16.mxu1 %v2038_v4 }
 0x475   :  { %v1110_v48 = vpop.f32.mrb[8].mxu1 }
 0x476   :  { %v1111_v49 = vadd.f32 %v1458_v47, %v1110_v48  ;;  %v1561_v52 = vpop.f32.mrb[9].mxu1 }
 0x477   :  { %v1113_v54 = vpop.f32.mrb[10].mxu1 }
 0x478   :  { %v1114_v55 = vadd.f32 %v1458_v47, %v1113_v54  ;;  %v1562_v56 = vpop.f32.mrb[11].mxu1  ;;  %1806 = vtanh.f32 %v1111_v49 }
 0x47a   :  { %1808 = vtanh.f32 %v1114_v55 }
 0x482   :  { %v1807_v57 = vpop.eup %1806 }
 0x484   :  { %v1809_v58 = vpop.eup %1808 }
 0x485   :  { %v1119_v60 = vpack.c.bf16 %v1809_v58, %v1807_v57 }
 0x487   :  { %1580 = vmatmul.mubr.bf16.vlgmr.msra.gmra.mrb[12].mxu1 %v1119_v60 }
 0x488   :  { %1584 = vmatpush3.bf16.msra.mxu1 %v1770_v59  ;;  %1599 = vmatprep.mubr.msk.bf16.mxu1 %vm2039_vm1, %v2038_v4 }
 0x489   :  { %1585 = vmatprep.subr.bf16.mxu1 %v2038_v4 }
 0x48c   :  { %1586 = vmatpush3.bf16.msra.mxu1 %v1771_v61 }
 0x48d   :  { %1587 = vmatprep.subr.bf16.mxu1 %v2038_v4 }
 0x490   :  { %1588 = vmatpush3.bf16.msra.mxu1 %v1772_v62 }
 0x491   :  { %1589 = vmatprep.subr.bf16.mxu1 %v2038_v4 }
 0x494   :  { %1590 = vmatpush3.bf16.msra.mxu1 %v1773_v63 }
 0x495   :  { %1591 = vmatprep.subr.bf16.mxu1 %v2038_v4 }
 0x498   :  { %1592 = vmatpush3.bf16.msra.mxu1 %v1774_v0 }
 0x499   :  { %1593 = vmatprep.subr.bf16.mxu1 %v2038_v4 }
 0x49c   :  { %1594 = vmatpush3.bf16.msra.mxu1 %v1775_v1 }
 0x49d   :  { %1595 = vmatprep.subr.bf16.mxu1 %v2038_v4 }
 0x4a0   :  { %1596 = vmatpush3.bf16.msra.mxu1 %v1776_v2 }
 0x4a1   :  { %1597 = vmatprep.subr.bf16.mxu1 %v2038_v4 }
 0x4a4   :  { %1598 = vmatpush3.bf16.msra.mxu1 %v1777_v3 }
 0x55a   :  { %v1225_v6 = vpop.f32.mrb[12].mxu1 }
 0x55b   :  { %v1226_v7 = vadd.f32 %v1467_v5, %v1225_v6  ;;  %v1581_v8 = vpop.f32.mrb[13].mxu1 }
 0x55c   :  { %v1228_v9 = vpop.f32.mrb[14].mxu1 }
 0x55d   :  { %v1229_v10 = vadd.f32 %v1467_v5, %v1228_v9  ;;  %v1582_v11 = vpop.f32.mrb[15].mxu1  ;;  %1810 = vtanh.f32 %v1226_v7 }
 0x55f   :  { %1812 = vtanh.f32 %v1229_v10 }
 0x567   :  { %v1811_v12 = vpop.eup %1810 }
 0x569   :  { %v1813_v13 = vpop.eup %1812 }
 0x56a   :  { %v1234_v14 = vpack.c.bf16 %v1813_v13, %v1811_v12 }
 0x56c   :  { %1600 = vmatmul.mubr.bf16.vlgmr.msra.gmra.mrb[16].mxu1 %v1234_v14 }
 0x63f   :  { %v1340_v16 = vpop.f32.mrb[16].mxu1 }
 0x640   :  { %v1601_v4 = vpop.f32.mrb[17].mxu1  ;;  %v1341_v18 = vadd.f32 %v1476_v15, %v1340_v16 }
 0x641   :  { %v1343_v17 = vpop.f32.mrb[18].mxu1 }
 0x642   :  { %v1344_v19 = vadd.f32 %v1476_v15, %v1343_v17  ;;  %v1602_v51 = vpop.f32.mrb[19].mxu1 }
 0x644   :  { %v1492_v20 = vpack.c.bf16 %v1344_v19, %v1341_v18 }
 0x646   :  { %1493 = vst [vmem:[%s2333_s13] sm:$0xff] %v1492_v20  }
 0x647   :  { %1361 = vsyncpa [#allocation3], 1 }
 0x648   :  { %1362 = vsyncpa [#allocation5], 1 }
 0x649   :  { %1363 = vsyncpa [#allocation8], 1 }
 0x64a   :  { %1364 = vsyncpa [#allocation11], 1 }
 0x64b   :  { %1365 = vsyncpa [#allocation14], 1 }

</bundles_post_ra>
